<compile_context>
chip_gen: v5e
topology: v5e:2x2
jax: 0.10.0
libtpu: 0.0.40
codegen_flags: <defaults>
</compile_context>

<pallas_src>
import jax
import jax.numpy as jnp
from jax.experimental import pallas as pl
from jax.experimental.pallas import tpu as pltpu


def _soft_ce_kernel(x_ref, y_ref, w_ref, out_ref):
    """One batch tile. x/y: [C, T] (classes x batch-lanes), w: [C, 1]."""
    x = x_ref[...].astype(jnp.float32)
    y = y_ref[...].astype(jnp.float32)
    w = w_ref[...].astype(jnp.float32)

    # Numerically-stable log_softmax over the class (sublane) axis.
    m = jnp.max(x, axis=0, keepdims=True)              # [1, T]
    z = x - m
    lse = jnp.log(jnp.sum(jnp.exp(z), axis=0, keepdims=True))
    lsm = z - lse                                       # [C, T]

    wy = w * y                                          # class_weight * label
    out_ref[0, 0] = -jnp.sum(wy * lsm)                  # partial numerator
    out_ref[0, 1] = jnp.sum(wy)                         # partial sum(w * label)


def _round_up(x, m):
    return (x + m - 1) // m * m


def cross_entropy_loss(cls_score, label, class_weight=None, tile_n=None):
    """Pallas TPU equivalent of CrossEntropyLoss.forward.

    cls_score:    [N, C] logits.
    label:        [N, C] soft / one-hot label, or [N] integer hard label
                  (converted to one-hot; identical to F.cross_entropy math).
    class_weight: optional [C].
    Returns a scalar float32 loss.
    """
    n, c = cls_score.shape
    if label.ndim == 1:  # hard-label branch: one-hot gives identical semantics
        label = jax.nn.one_hot(label, c, dtype=cls_score.dtype)
    has_w = class_weight is not None
    w = (jnp.asarray(class_weight, jnp.float32) if has_w
         else jnp.ones((c,), jnp.float32))

    lane = 128
    if tile_n is None:
        # Largest batch tile keeping 2 inputs x 2 double-buffers of (C, tile_n)
        # f32 well under the scoped VMEM limit (v7x: 32 MiB): ~2 MiB per block.
        target_elems = (2 * 1024 * 1024) // 4
        max_tile = max(lane, (target_elems // max(c, 1)) // lane * lane)
        tile_n = min(_round_up(n, lane), max_tile)
    n_pad = _round_up(n, tile_n)
    g = n_pad // tile_n

    # Lane-dense layout: batch on the 128-lane axis, classes on sublanes.
    # Padded rows carry label == 0 -> zero contribution to both partial sums.
    xt = jnp.pad(cls_score, ((0, n_pad - n), (0, 0))).T     # [C, n_pad]
    yt = jnp.pad(label, ((0, n_pad - n), (0, 0))).T         # [C, n_pad]
    w2 = w.reshape(c, 1)

    partials = pl.pallas_call(
        _soft_ce_kernel,
        out_shape=jax.ShapeDtypeStruct((g, 2), jnp.float32),
        grid_spec=pltpu.PrefetchScalarGridSpec(
            num_scalar_prefetch=0,
            grid=(g,),
            in_specs=[
                pl.BlockSpec((c, tile_n), lambda i: (0, i)),
                pl.BlockSpec((c, tile_n), lambda i: (0, i)),
                pl.BlockSpec((c, 1), lambda i: (0, 0)),
            ],
            out_specs=pl.BlockSpec((1, 2), lambda i: (i, 0),
                                   memory_space=pltpu.SMEM),
        ),
        compiler_params=pltpu.CompilerParams(
            dimension_semantics=("parallel",)),
    )(xt, yt, w2)

    num = jnp.sum(partials[:, 0])
    if has_w:
        return num / jnp.sum(partials[:, 1])
    return num / jnp.float32(n)          # true N, not the block shape


def _reference(cls_score, label, class_weight=None):
    """Pure-JAX transcription of the PyTorch module's forward (soft-label)."""
    lsm = jax.nn.log_softmax(cls_score.astype(jnp.float32), axis=1)
    lab = label.astype(jnp.float32)
    if class_weight is not None:
        wf = class_weight.astype(jnp.float32)
        lsm = lsm * wf[None, :]
        loss = -(lab * lsm).sum(1)
        return loss.sum() / jnp.sum(wf[None, :] * lab)
    loss = -(lab * lsm).sum(1)
    return loss.mean()


if __name__ == "__main__":
    key = jax.random.PRNGKey(0)
    k1, k2, k3, k4 = jax.random.split(key, 4)

    # Case 1: module's actual path — binary one-hot labels + class weight.
    N, C = 8, 2
    logits = jax.random.normal(k1, (N, C), dtype=jnp.float32)
    label_idx = jax.random.randint(k2, (N,), 0, C)
    onehot = jax.nn.one_hot(label_idx, C, dtype=jnp.float32)
    class_weight = jnp.array([1.0, 2.0], dtype=jnp.float32)

    loss = jax.block_until_ready(cross_entropy_loss(logits, onehot, class_weight))
    ref = _reference(logits, onehot, class_weight)
    assert jnp.allclose(loss, ref, atol=1e-5, rtol=1e-5), (loss, ref)

    # Case 2: no class weight (plain mean over the batch).
    loss2 = jax.block_until_ready(cross_entropy_loss(logits, onehot, None))
    ref2 = _reference(logits, onehot, None)
    assert jnp.allclose(loss2, ref2, atol=1e-5, rtol=1e-5), (loss2, ref2)

    # Case 3: multi-block grid + batch padding + non-one-hot soft labels.
    N3, C3 = 200, 4
    logits3 = jax.random.normal(k3, (N3, C3), dtype=jnp.float32)
    soft3 = jax.nn.softmax(jax.random.normal(k4, (N3, C3), jnp.float32), axis=1)
    w3 = jnp.array([1.0, 0.5, 2.0, 1.5], dtype=jnp.float32)
    loss3 = jax.block_until_ready(
        cross_entropy_loss(logits3, soft3, w3, tile_n=128))   # g=2, pad 200->256
    ref3 = _reference(logits3, soft3, w3)
    assert jnp.allclose(loss3, ref3, atol=1e-5, rtol=1e-5), (loss3, ref3)

    print("KERNEL_OK")
</pallas_src>

<mosaic_0001>
module attributes {stable_mosaic.version = 11 : i64} {
  func.func @_soft_ce_kernel(%arg0: i32, %arg1: memref<2x128xf32, #tpu.memory_space<vmem>>, %arg2: memref<2x128xf32, #tpu.memory_space<vmem>>, %arg3: memref<2x1xf32, #tpu.memory_space<vmem>>, %arg4: memref<1x2xf32, #tpu.memory_space<smem>>) attributes {dimension_semantics = [#tpu.dimension_semantics<parallel>], iteration_bounds = array<i64: 1>, scalar_prefetch = 0 : i64, scratch_operands = 0 : i64, tpu.core_type = #tpu.core_type<tc>, window_params = [{transform_indices = @transform_0, window_bounds = array<i64: 2, 128>}, {transform_indices = @transform_1, window_bounds = array<i64: 2, 128>}, {pipeline_mode = #tpu.pipeline_mode<synchronous>, transform_indices = @transform_2, window_bounds = array<i64: 2, 1>}, {transform_indices = @transform_3, window_bounds = array<i64: 1, 2>}]} {
    %c0 = arith.constant 0 : index
    %c0_0 = arith.constant 0 : index
    %0 = vector.load %arg1[%c0, %c0_0] : memref<2x128xf32, #tpu.memory_space<vmem>>, vector<2x128xf32>
    %c0_1 = arith.constant 0 : index
    %c0_2 = arith.constant 0 : index
    %1 = vector.load %arg2[%c0_1, %c0_2] : memref<2x128xf32, #tpu.memory_space<vmem>>, vector<2x128xf32>
    %c0_3 = arith.constant 0 : index
    %c0_4 = arith.constant 0 : index
    %2 = vector.load %arg3[%c0_3, %c0_4] : memref<2x1xf32, #tpu.memory_space<vmem>>, vector<2x1xf32>
    %cst = arith.constant dense<0xFF800000> : vector<128xf32>
    %3 = vector.multi_reduction <maximumf>, %0, %cst [0] : vector<2x128xf32> to vector<128xf32>
    %4 = vector.shape_cast %3 : vector<128xf32> to vector<1x128xf32>
    %5 = vector.broadcast %4 : vector<1x128xf32> to vector<2x128xf32>
    %6 = arith.subf %0, %5 : vector<2x128xf32>
    %7 = math.exp %6 : vector<2x128xf32>
    %cst_5 = arith.constant dense<0.000000e+00> : vector<128xf32>
    %8 = vector.multi_reduction <add>, %7, %cst_5 [0] : vector<2x128xf32> to vector<128xf32>
    %9 = vector.shape_cast %8 : vector<128xf32> to vector<1x128xf32>
    %10 = math.log %9 : vector<1x128xf32>
    %11 = vector.broadcast %10 : vector<1x128xf32> to vector<2x128xf32>
    %12 = arith.subf %6, %11 : vector<2x128xf32>
    %13 = vector.broadcast %2 : vector<2x1xf32> to vector<2x128xf32>
    %14 = arith.mulf %13, %1 : vector<2x128xf32>
    %15 = arith.mulf %14, %12 : vector<2x128xf32>
    %16 = vector.shape_cast %15 : vector<2x128xf32> to vector<1x2x128xf32>
    %cst_6 = arith.constant dense<0.000000e+00> : vector<1xf32>
    %17 = vector.multi_reduction <add>, %16, %cst_6 [1, 2] : vector<1x2x128xf32> to vector<1xf32>
    %18 = vector.shape_cast %17 : vector<1xf32> to vector<1x1x1xf32>
    %19 = vector.extract %18[0, 0, 0] : f32 from vector<1x1x1xf32>
    %cst_7 = arith.constant 0.000000e+00 : f32
    %20 = arith.subf %cst_7, %19 : f32
    %c0_8 = arith.constant 0 : index
    %c0_9 = arith.constant 0 : index
    %21 = memref.load %arg4[%c0_8, %c0_9] : memref<1x2xf32, #tpu.memory_space<smem>>
    memref.store %20, %arg4[%c0_8, %c0_9] : memref<1x2xf32, #tpu.memory_space<smem>>
    %22 = vector.shape_cast %14 : vector<2x128xf32> to vector<1x2x128xf32>
    %cst_10 = arith.constant dense<0.000000e+00> : vector<1xf32>
    %23 = vector.multi_reduction <add>, %22, %cst_10 [1, 2] : vector<1x2x128xf32> to vector<1xf32>
    %24 = vector.shape_cast %23 : vector<1xf32> to vector<1x1x1xf32>
    %25 = vector.extract %24[0, 0, 0] : f32 from vector<1x1x1xf32>
    %c0_11 = arith.constant 0 : index
    %c1 = arith.constant 1 : index
    %26 = memref.load %arg4[%c0_11, %c1] : memref<1x2xf32, #tpu.memory_space<smem>>
    memref.store %25, %arg4[%c0_11, %c1] : memref<1x2xf32, #tpu.memory_space<smem>>
    return
  }
  func.func @transform_0(%arg0: i32) -> (i32, i32) {
    %c0_i32 = arith.constant 0 : i32
    %c0_i32_0 = arith.constant 0 : i32
    return %c0_i32, %arg0 : i32, i32
  }
  func.func @transform_1(%arg0: i32) -> (i32, i32) {
    %c0_i32 = arith.constant 0 : i32
    %c0_i32_0 = arith.constant 0 : i32
    return %c0_i32, %arg0 : i32, i32
  }
  func.func @transform_2(%arg0: i32) -> (i32, i32) {
    %c0_i32 = arith.constant 0 : i32
    %c0_i32_0 = arith.constant 0 : i32
    %c0_i32_1 = arith.constant 0 : i32
    return %c0_i32, %c0_i32_0 : i32, i32
  }
  func.func @transform_3(%arg0: i32) -> (i32, i32) {
    %c0_i32 = arith.constant 0 : i32
    %c0_i32_0 = arith.constant 0 : i32
    return %arg0, %c0_i32 : i32, i32
  }
}

</mosaic_0001>

<bundles_post_ra>
// kernel: tpu_custom_call.1
= control target key start
LH: loop header
LB: loop body
LE: loop exit
PB: predicated region body
PF: predicated region fallthrough
CT: control target
= control target key end

     0   :  { %8 = vsyncpa [#allocation3], 0  ;;  %s192_s0 = inlined_call_operand.vmem [shape: f32[2,128], index: 0, kind: input, shape index: {}]   ;;  %s193_s1 = inlined_call_operand.hbm [shape: f32[2,128], index: 1, kind: input, shape index: {}]   ;;  %s194_s2 = inlined_call_operand.vmem [shape: f32[2,1], index: 2, kind: input, shape index: {}]   ;;  %s195_s3 = inlined_call_operand.hbm [shape: f32[1,2], index: 3, kind: output, shape index: {}]  }
   0x1   :  { %9 = vsyncpa [#allocation4], 0  ;;  %s17_s14 = sshll.u32 %s193_s1, 4  ;;  %s153_s15 = smov [#allocation2]   ;;  %s18_s14 = int_to_ptr.hbm [resolvable:$true] %s17_s14 }
   0x2   :  { %s19_s16 = sshll.u32 %s153_s15, 4  ;;  %s20_s16 = int_to_ptr.vmem [resolvable:$true] %s19_s16 }
   0x3   :  { %22 = dma.hbm_to_vmem [thread:$0]  %s18_s14, 32, %s20_s16, [#allocation3]  }
   0x4   :  { %149 = dma.done.wait [#allocation3], 32  }
   0x5   :  { %150 = vsyncadd [#allocation3], 4294967264  ;;  %v154_v0 = vmov 0   ;;  %v31_v1 = vld [vmem:[%s194_s2] sm:$0x3]  ;;  %vm32_vm0 = vcmask 1041408  }
   0x6   :  { %108 = vset.pattern.permute.xlu0 %v154_v0  ;;  %v29_v2 = vld [vmem:[%s192_s0] sm:$0x3]  ;;  %s90_s2 = sshll.u32 %s195_s3, 4  ;;  %s155_s24 = smov [#allocation5]   ;;  %s91_s2 = int_to_ptr.hbm [resolvable:$true] %s90_s2 }
   0x7   :  { %55 = vperm.xlu0 %108, %v31_v1   ;;  %v33_v3 = vsel %vm32_vm0, %v29_v2, -inf  ;;  %v30_v22 = vld [vmem:[#allocation2] sm:$0x3] }
   0x8   :  { %v34_v4 = vrot.slane %v33_v3, 4 }
   0xa   :  { %v35_v5 = vmax.f32 %v33_v3, %v34_v4 }
   0xc   :  { %v36_v6 = vrot.slane %v35_v5, 2 }
   0xe   :  { %v37_v7 = vmax.f32 %v35_v5, %v36_v6 }
  0x10   :  { %v38_v8 = vrot.slane %v37_v7, 1 }
  0x12   :  { %v39_v9 = vmax.f32 %v37_v7, %v38_v8 }
  0x14   :  { %v40_v10 = vsub.f32 %v29_v2, %v39_v9 }
  0x16   :  { %v41_v11 = vmul.f32 1.442695, %v40_v10 }
  0x18   :  { %109 = vpow2.f32 %v41_v11 }
  0x1e   :  { %v110_v12 = vpop.eup %109 }
  0x1f   :  { %v43_v13 = vsel %vm32_vm0, %v110_v12, 0.0 }
  0x20   :  { %v44_v14 = vrot.slane %v43_v13, 4 }
  0x22   :  { %v45_v15 = vadd.f32 %v44_v14, %v43_v13 }
  0x24   :  { %v46_v16 = vrot.slane %v45_v15, 2 }
  0x26   :  { %v47_v17 = vadd.f32 %v46_v16, %v45_v15 }
  0x28   :  { %v48_v18 = vrot.slane %v47_v17, 1 }
  0x2a   :  { %v49_v19 = vadd.f32 %v48_v18, %v47_v17 }
  0x2c   :  { %111 = vlog2.f32 %v49_v19 }
  0x32   :  { %v112_v20 = vpop.eup %111 }
  0x33   :  { %v51_v21 = vmul.f32 0.6931472, %v112_v20 }
  0x35   :  { %v52_v23 = vsub.f32 %v40_v10, %v51_v21 }
  0x79   :  { %v56_v24 = vpop.permute.xlu0 %55 }
  0x7a   :  { %v58_v25 = vmul.f32 %v56_v24, %v30_v22 }
  0x7c   :  { %v73_v26 = vsel %vm32_vm0, %v58_v25, 0.0  ;;  %v59_v27 = vmul.f32 %v58_v25, %v52_v23 }
  0x7d   :  { %74 = vadd.xlane.f32.xlu1 %v73_v26 }
  0x7e   :  { %v60_v28 = vsel %vm32_vm0, %v59_v27, 0.0 }
  0x7f   :  { %61 = vadd.xlane.f32.xlu0 %v60_v28 }
  0xf0   :  { %v75_v29 = vpop.xlane.xlu1 %74 }
  0xf1   :  { %v76_v30 = vrot.slane %v75_v29, 4 }
  0xf2   :  { %v62_v31 = vpop.xlane.xlu0 %61 }
  0xf3   :  { %v77_v32 = vadd.f32 %v76_v30, %v75_v29  ;;  %v63_v33 = vrot.slane %v62_v31, 4 }
  0xf5   :  { %v78_v34 = vrot.slane %v77_v32, 2  ;;  %v64_v35 = vadd.f32 %v63_v33, %v62_v31 }
  0xf7   :  { %v79_v36 = vadd.f32 %v78_v34, %v77_v32  ;;  %v65_v37 = vrot.slane %v64_v35, 2 }
  0xf9   :  { %v66_v38 = vadd.f32 %v65_v37, %v64_v35  ;;  %v80_v39 = vrot.slane %v79_v36, 1 }
  0xfb   :  { %v67_v40 = vrot.slane %v66_v38, 1  ;;  %v81_v42 = vadd.f32 %v80_v39, %v79_v36 }
  0xfd   :  { %v68_v41 = vadd.f32 %v67_v40, %v66_v38 }
  0xff   :  { %101 = vpush %v68_v41 }
 0x100   :  { %103 = vpush %v81_v42 }
 0x130   :  { %s102_s21 = spop %101 }
 0x131   :  { %s70_s22 = ssub.f32 0.0, %s102_s21  ;;  %s104_s23 = spop %103 }
 0x132   :  { %84 = sst [smem:[#allocation5 + $0x1]] %s104_s23 }
 0x133   :  { %72 = sst [smem:[#allocation5]] %s70_s22 }
 0x134   :  { %93 = dma.smem_to_hbm %s155_s24, 16, %s91_s2, [#allocation4]  }
 0x135   :  { %151 = dma.done.wait [#allocation4], 16  }
 0x136   :  { %152 = vsyncadd [#allocation4], 4294967280 }
 0x137   :  { %98 = sfence }
 0x138   :  { %99 = vsyncpa [#allocation3], 1 }
 0x139   :  { %100 = vsyncpa [#allocation4], 1 }

</bundles_post_ra>
